<compile_context>
chip_gen: v6e
topology: v6e:2x2x1
jax: 0.10.0
libtpu: 0.0.40
codegen_flags: <defaults>
</compile_context>

<pallas_src>
import functools

import jax
import jax.numpy as jnp
from jax.experimental import pallas as pl
from jax.experimental.pallas import tpu as pltpu


def _round_up(x: int, m: int) -> int:
    return ((x + m - 1) // m) * m


def _pick_tile_b(batch: int, requested: int) -> int:
    """Pick the batch tile.

    Small batches: one whole-array block (block dims == array dims are always
    legal).  Large batches: a multiple of 16 (bf16 sublane tile) chosen so the
    grid has >= 4 steps -- on v7x that lets dimension_semantics=("parallel",)
    feed both TensorCores and still leaves pipelining per core.
    """
    if batch <= 1024 and batch <= max(requested, 16):
        return batch
    quarter = _round_up(pl.cdiv(batch, 4), 16)
    tile = min(requested, quarter, batch)
    return max(16, (tile // 16) * 16)


def decoder_kernel(z_ref, w3_ref, b3_ref, w4_ref, b4_ref, out_ref):
    # fc3 + ReLU: bf16 MXU operands (z cast in-register), f32 accumulation,
    # f32 elementwise epilogue.
    z = z_ref[...].astype(jnp.bfloat16)
    h = jnp.dot(z, w3_ref[...], preferred_element_type=jnp.float32)
    h = jnp.maximum(h + b3_ref[...], 0.0)          # (TILE_B, H) + (1, H)

    # fc4 + sigmoid.
    o = jnp.dot(h.astype(jnp.bfloat16), w4_ref[...],
                preferred_element_type=jnp.float32)
    o = o + b4_ref[...]                            # (TILE_B, O) + (1, O)
    # sigmoid(x) = 0.5 * tanh(0.5 * x) + 0.5  -> one EUP op + one VPU fma.
    o = 0.5 * jnp.tanh(0.5 * o) + 0.5

    out_ref[...] = o.astype(out_ref.dtype)


def prepare_decoder_params(w3, b3, w4, b4):
    """One-time parameter prep (do this OUTSIDE the hot path).

    Weights (stored (in, out), i.e. transposed vs. nn.Linear) are cast to bf16
    MXU operands; biases become f32 (1, dim) row vectors.
    """
    return (w3.astype(jnp.bfloat16),
            b3.astype(jnp.float32).reshape(1, -1),
            w4.astype(jnp.bfloat16),
            b4.astype(jnp.float32).reshape(1, -1))


@functools.partial(jax.jit, static_argnames=("tile_b", "out_dtype"))
def decoder_forward(z, w3, b3, w4, b4, *, tile_b: int = 4096,
                    out_dtype=jnp.bfloat16):
    """z: (B, latent) f32; w3: (latent, hidden); b3: (1, hidden) or (hidden,);
       w4: (hidden, out); b4: (1, out) or (out,).

    Pass params through prepare_decoder_params once; the astype/reshape below
    are then no-ops at trace time.  Returns (B, out) in `out_dtype`
    (bfloat16 by default to halve HBM writeback bytes)."""
    batch, latent = z.shape
    hidden = w3.shape[1]
    out_dim = w4.shape[1]

    w3 = w3.astype(jnp.bfloat16)
    w4 = w4.astype(jnp.bfloat16)
    b3 = b3.astype(jnp.float32).reshape(1, hidden)
    b4 = b4.astype(jnp.float32).reshape(1, out_dim)

    tb = _pick_tile_b(batch, tile_b)
    grid = (pl.cdiv(batch, tb),)   # ragged edge: masked stores on last block

    return pl.pallas_call(
        decoder_kernel,
        out_shape=jax.ShapeDtypeStruct((batch, out_dim), out_dtype),
        grid=grid,
        in_specs=[
            # Batch-tiled activation (full latent extent -> contiguous DMA).
            pl.BlockSpec((tb, latent), lambda i: (i, 0)),
            # Weights / biases: constant index_map -> resident across the grid.
            pl.BlockSpec((latent, hidden), lambda i: (0, 0)),
            pl.BlockSpec((1, hidden), lambda i: (0, 0)),
            pl.BlockSpec((hidden, out_dim), lambda i: (0, 0)),
            pl.BlockSpec((1, out_dim), lambda i: (0, 0)),
        ],
        # Full-feature-extent output block: contiguous HBM writeback, no
        # padded bytes, no post-call slice.
        out_specs=pl.BlockSpec((tb, out_dim), lambda i: (i, 0)),
        compiler_params=pltpu.CompilerParams(
            dimension_semantics=("parallel",),
            vmem_limit_bytes=32 * 1024 * 1024,
        ),
    )(z, w3, b3, w4, b4)


def reference_forward(z, w3, b3, w4, b4):
    h = jnp.maximum(z @ w3 + b3, 0.0)
    return jax.nn.sigmoid(h @ w4 + b4)


if __name__ == "__main__":
    # Small shapes implied by the module: batch=8, latent=16, hidden=32, output=64.
    B, LATENT, HIDDEN, OUTPUT = 8, 16, 32, 64

    key = jax.random.PRNGKey(0)
    kz, k3w, k3b, k4w, k4b = jax.random.split(key, 5)

    z = jax.random.normal(kz, (B, LATENT), dtype=jnp.float32)

    # Deterministic "Kaiming-ish" init, stored as (in, out) for the kernel.
    w3 = jax.random.normal(k3w, (LATENT, HIDDEN), dtype=jnp.float32) * (1.0 / LATENT ** 0.5)
    b3 = jax.random.normal(k3b, (HIDDEN,), dtype=jnp.float32) * 0.01
    w4 = jax.random.normal(k4w, (HIDDEN, OUTPUT), dtype=jnp.float32) * (1.0 / HIDDEN ** 0.5)
    b4 = jax.random.normal(k4b, (OUTPUT,), dtype=jnp.float32) * 0.01

    # One-time parameter prep (bf16 weights, (1, dim) f32 biases).
    w3_p, b3_p, w4_p, b4_p = prepare_decoder_params(w3, b3, w4, b4)

    out = decoder_forward(z, w3_p, b3_p, w4_p, b4_p)
    out = jax.block_until_ready(out)

    ref = reference_forward(z, w3, b3, w4, b4)
    assert out.shape == (B, OUTPUT), out.shape
    # bf16 MXU operands + bf16 output store -> loosened tolerance vs. the
    # pure-f32 reference (sigmoid output is bounded in (0, 1)).
    err = float(jnp.max(jnp.abs(out.astype(jnp.float32) - ref)))
    assert err < 2e-2, err

    print("KERNEL_OK")
</pallas_src>

<mosaic_0001>
module attributes {stable_mosaic.version = 11 : i64} {
  func.func @decoder_kernel(%arg0: i32, %arg1: memref<8x16xf32, #tpu.memory_space<vmem>>, %arg2: memref<16x32xbf16, #tpu.memory_space<vmem>>, %arg3: memref<1x32xf32, #tpu.memory_space<vmem>>, %arg4: memref<32x64xbf16, #tpu.memory_space<vmem>>, %arg5: memref<1x64xf32, #tpu.memory_space<vmem>>, %arg6: memref<8x64xbf16, #tpu.memory_space<vmem>>) attributes {dimension_semantics = [#tpu.dimension_semantics<parallel>], iteration_bounds = array<i64: 1>, scalar_prefetch = 0 : i64, scratch_operands = 0 : i64, tpu.core_type = #tpu.core_type<tc>, window_params = [{transform_indices = @transform_0, window_bounds = array<i64: 8, 16>}, {pipeline_mode = #tpu.pipeline_mode<synchronous>, transform_indices = @transform_1, window_bounds = array<i64: 16, 32>}, {pipeline_mode = #tpu.pipeline_mode<synchronous>, transform_indices = @transform_2, window_bounds = array<i64: 1, 32>}, {pipeline_mode = #tpu.pipeline_mode<synchronous>, transform_indices = @transform_3, window_bounds = array<i64: 32, 64>}, {pipeline_mode = #tpu.pipeline_mode<synchronous>, transform_indices = @transform_4, window_bounds = array<i64: 1, 64>}, {transform_indices = @transform_5, window_bounds = array<i64: 8, 64>}]} {
    %c0 = arith.constant 0 : index
    %c0_0 = arith.constant 0 : index
    %0 = vector.load %arg1[%c0, %c0_0] : memref<8x16xf32, #tpu.memory_space<vmem>>, vector<8x16xf32>
    %1 = arith.truncf %0 : vector<8x16xf32> to vector<8x16xbf16>
    %c0_1 = arith.constant 0 : index
    %c0_2 = arith.constant 0 : index
    %2 = vector.load %arg2[%c0_1, %c0_2] : memref<16x32xbf16, #tpu.memory_space<vmem>>, vector<16x32xbf16>
    %cst = arith.constant dense<0.000000e+00> : vector<8x32xf32>
    %3 = tpu.matmul %1, %2, %cst {dimension_numbers = #tpu.dot_dimension_numbers<[1], [0], [0], [1], [0, 0, 1, 1], [], []>} : vector<8x16xbf16>, vector<16x32xbf16>, vector<8x32xf32> -> vector<8x32xf32>
    %c0_3 = arith.constant 0 : index
    %c0_4 = arith.constant 0 : index
    %4 = vector.load %arg3[%c0_3, %c0_4] : memref<1x32xf32, #tpu.memory_space<vmem>>, vector<1x32xf32>
    %5 = vector.broadcast %4 : vector<1x32xf32> to vector<8x32xf32>
    %6 = arith.addf %3, %5 : vector<8x32xf32>
    %cst_5 = arith.constant 0.000000e+00 : f32
    %7 = vector.broadcast %cst_5 : f32 to vector<8x32xf32>
    %8 = arith.maximumf %6, %7 : vector<8x32xf32>
    %9 = arith.truncf %8 : vector<8x32xf32> to vector<8x32xbf16>
    %c0_6 = arith.constant 0 : index
    %c0_7 = arith.constant 0 : index
    %10 = vector.load %arg4[%c0_6, %c0_7] : memref<32x64xbf16, #tpu.memory_space<vmem>>, vector<32x64xbf16>
    %cst_8 = arith.constant dense<0.000000e+00> : vector<8x64xf32>
    %11 = tpu.matmul %9, %10, %cst_8 {dimension_numbers = #tpu.dot_dimension_numbers<[1], [0], [0], [1], [0, 0, 1, 1], [], []>} : vector<8x32xbf16>, vector<32x64xbf16>, vector<8x64xf32> -> vector<8x64xf32>
    %c0_9 = arith.constant 0 : index
    %c0_10 = arith.constant 0 : index
    %12 = vector.load %arg5[%c0_9, %c0_10] : memref<1x64xf32, #tpu.memory_space<vmem>>, vector<1x64xf32>
    %13 = vector.broadcast %12 : vector<1x64xf32> to vector<8x64xf32>
    %14 = arith.addf %11, %13 : vector<8x64xf32>
    %cst_11 = arith.constant 5.000000e-01 : f32
    %15 = vector.broadcast %cst_11 : f32 to vector<8x64xf32>
    %16 = arith.mulf %15, %14 : vector<8x64xf32>
    %17 = math.tanh %16 : vector<8x64xf32>
    %cst_12 = arith.constant 5.000000e-01 : f32
    %18 = vector.broadcast %cst_12 : f32 to vector<8x64xf32>
    %19 = arith.mulf %18, %17 : vector<8x64xf32>
    %cst_13 = arith.constant 5.000000e-01 : f32
    %20 = vector.broadcast %cst_13 : f32 to vector<8x64xf32>
    %21 = arith.addf %19, %20 : vector<8x64xf32>
    %22 = arith.truncf %21 : vector<8x64xf32> to vector<8x64xbf16>
    %c0_14 = arith.constant 0 : index
    %c0_15 = arith.constant 0 : index
    %23 = vector.load %arg6[%c0_14, %c0_15] : memref<8x64xbf16, #tpu.memory_space<vmem>>, vector<8x64xbf16>
    tpu.vector_store %arg6[%c0_14, %c0_15], %22 {strides = array<i32>} : memref<8x64xbf16, #tpu.memory_space<vmem>>, vector<8x64xbf16>,
    return
  }
  func.func @transform_0(%arg0: i32) -> (i32, i32) {
    %c0_i32 = arith.constant 0 : i32
    %c0_i32_0 = arith.constant 0 : i32
    return %arg0, %c0_i32 : i32, i32
  }
  func.func @transform_1(%arg0: i32) -> (i32, i32) {
    %c0_i32 = arith.constant 0 : i32
    %c0_i32_0 = arith.constant 0 : i32
    %c0_i32_1 = arith.constant 0 : i32
    return %c0_i32, %c0_i32_0 : i32, i32
  }
  func.func @transform_2(%arg0: i32) -> (i32, i32) {
    %c0_i32 = arith.constant 0 : i32
    %c0_i32_0 = arith.constant 0 : i32
    %c0_i32_1 = arith.constant 0 : i32
    return %c0_i32, %c0_i32_0 : i32, i32
  }
  func.func @transform_3(%arg0: i32) -> (i32, i32) {
    %c0_i32 = arith.constant 0 : i32
    %c0_i32_0 = arith.constant 0 : i32
    %c0_i32_1 = arith.constant 0 : i32
    return %c0_i32, %c0_i32_0 : i32, i32
  }
  func.func @transform_4(%arg0: i32) -> (i32, i32) {
    %c0_i32 = arith.constant 0 : i32
    %c0_i32_0 = arith.constant 0 : i32
    %c0_i32_1 = arith.constant 0 : i32
    return %c0_i32, %c0_i32_0 : i32, i32
  }
  func.func @transform_5(%arg0: i32) -> (i32, i32) {
    %c0_i32 = arith.constant 0 : i32
    %c0_i32_0 = arith.constant 0 : i32
    return %arg0, %c0_i32 : i32, i32
  }
}

</mosaic_0001>

<bundles_post_ra>
// kernel: decoder_forward.1
= control target key start
LH: loop header
LB: loop body
LE: loop exit
PB: predicated region body
PF: predicated region fallthrough
CT: control target
= control target key end

     0   :  { %10 = vsyncpa [#allocation3], 0  ;;  %s395_s0 = inlined_call_operand.hbm [shape: f32[8,16], index: 0, kind: input, shape index: {}]   ;;  %s396_s1 = inlined_call_operand.hbm [shape: bf16[16,32], index: 1, kind: input, shape index: {}]   ;;  %s397_s2 = inlined_call_operand.vmem [shape: f32[1,32], index: 2, kind: input, shape index: {}]   ;;  %s398_s3 = inlined_call_operand.hbm [shape: bf16[32,64], index: 3, kind: input, shape index: {}]   ;;  %s399_s4 = inlined_call_operand.vmem [shape: f32[1,64], index: 4, kind: input, shape index: {}]   ;;  %s400_s5 = inlined_call_operand.hbm [shape: bf16[8,64], index: 5, kind: output, shape index: {}]  }
   0x1   :  { %11 = vsyncpa [#allocation6], 0 }
   0x2   :  { %12 = vsyncpa [#allocation4], 0  ;;  %s339_s18 = smov [#allocation5]  }
   0x3   :  { %s28_s19 = sshll.u32 %s339_s18, 4  ;;  %s29_s19 = int_to_ptr.vmem [resolvable:$true] %s28_s19 }
   0x4   :  { %s261_s20 = scalar_lea.vmem %s29_s19, 128  ;;  %p266_p1 = scmp.lt.s32.totalorder %s29_s19, %s29_s19 }
   0x5   :  { %p262_p0 = scmp.ne.s32.totalorder %s29_s19, %s261_s20  ;;  %p267_p2 = scmp.lt.s32.totalorder %s261_s20, %s261_s20 }
   0x7   :  { %p268_p3 = por %p267_p2, %p266_p1 }
   0x9   :  { %p269_p4 = pnand %p268_p3, %p262_p0 }
   0xb   :  { %272 = shalt.err (!%p269_p4)
}
   0xc   :  { %s340_s21 = smov 64   ;;  %s341_s22 = smov 4  }
   0xd   :  { %34 = dma.hbm_to_vmem [thread:$0]  %s396_s1, 128, %s29_s19, [#allocation6], %s340_s21, %s340_s21, %s341_s22  }
   0xe   :  { %s342_s25 = smov [#allocation2]   ;;  %s343_s27 = smov [#allocation7]  }
   0xf   :  { %s19_s26 = sshll.u32 %s342_s25, 4  ;;  %s42_s28 = sshll.u32 %s343_s27, 4  ;;  %s20_s26 = int_to_ptr.vmem [resolvable:$true] %s19_s26  ;;  %s43_s28 = int_to_ptr.vmem [resolvable:$true] %s42_s28 }
  0x10   :  { %s281_s29 = scalar_lea.vmem %s20_s26, 128  ;;  %p286_p6 = scmp.lt.s32.totalorder %s20_s26, %s20_s26 }
  0x11   :  { %p282_p5 = scmp.ne.s32.totalorder %s20_s26, %s281_s29  ;;  %p287_p7 = scmp.lt.s32.totalorder %s281_s29, %s281_s29 }
  0x13   :  { %p288_p8 = por %p287_p7, %p286_p6 }
  0x15   :  { %p289_p9 = pnand %p288_p8, %p282_p5 }
  0x17   :  { %292 = shalt.err (!%p289_p9)
}
  0x18   :  { %22 = dma.hbm_to_vmem [thread:$0]  %s395_s0, 128, %s20_s26, [#allocation3]  }
  0x19   :  { %s301_s7 = scalar_lea.vmem %s43_s28, 256  ;;  %p306_p11 = scmp.lt.s32.totalorder %s43_s28, %s43_s28 }
  0x1a   :  { %p302_p10 = scmp.ne.s32.totalorder %s43_s28, %s301_s7  ;;  %p307_p12 = scmp.lt.s32.totalorder %s301_s7, %s301_s7 }
  0x1c   :  { %p308_p13 = por %p307_p12, %p306_p11 }
  0x1e   :  { %p309_p0 = pnand %p308_p13, %p302_p10 }
  0x20   :  { %312 = shalt.err (!%p309_p0)
}
  0x21   :  { %48 = dma.hbm_to_vmem [thread:$0]  %s398_s3, 256, %s43_s28, [#allocation6], %s340_s21, %s340_s21, %s341_s22  }
  0x22   :  { %333 = dma.done.wait [#allocation3], 128  }
  0x23   :  { %334 = vsyncadd [#allocation3], 4294967168 }
  0x24   :  { %335 = dma.done.wait [#allocation6], 384  }
  0x25   :  { %336 = vsyncadd [#allocation6], 4294966912  ;;  %v344_v0 = vmov 0.0   ;;  %vm345_vm0 = vmmov 0   ;;  %v248_v1 = vld [vmem:[#allocation5] sm:$0xff]   ;;  %v61_v2 = vld [vmem:[#allocation2] sm:$0xff] }
  0x26   :  { %226 = vmatprep.subr.bf16.mxu0 %v344_v0  ;;  %228 = vmatprep.mubr.msk.bf16.mxu0 %vm345_vm0, %v344_v0  ;;  %vm78_vm1 = vcmask 130048   ;;  %v62_v3 = vpack.c.bf16 %v61_v2, %v61_v2  ;;  %v249_v4 = vld [vmem:[#allocation7 + $0x8] sm:$0xff]   ;;  %v250_v5 = vld [vmem:[#allocation7] sm:$0xff]   ;;  %v214_v6 = vld [vmem:[%s397_s2] ss:$0 sm:$0xff]  ;;  %vm147_vm2 = vcmask 261120  }
  0x27   :  { %232 = vmatprep.subr.bf16.mxu1 %v344_v0  ;;  %236 = vmatprep.mubr.msk.bf16.mxu1 %vm345_vm0, %v344_v0  ;;  %v217_v14 = vld [vmem:[%s399_s4] ss:$0 sm:$0xff]  ;;  %s346_s2 = smov [#allocation8]   ;;  %vm196_vm3 = vcmask 519168  }
  0x28   :  { %227 = vmatpush3.bf16.msra.mxu0 %v248_v1  ;;  %233 = vmatpush3.bf16.msra.mxu1 %v249_v4  ;;  %s204_s11 = sshll.u32 %s346_s2, 4  ;;  %s205_s11 = int_to_ptr.vmem [resolvable:$true] %s204_s11 }
  0x29   :  { %234 = vmatprep.subr.bf16.mxu1 %v344_v0  ;;  %s313_s12 = scalar_lea.vmem %s205_s11, 64  ;;  %p318_p2 = scmp.lt.s32.totalorder %s205_s11, %s205_s11 }
  0x2a   :  { %p314_p1 = scmp.ne.s32.totalorder %s205_s11, %s313_s12  ;;  %p319_p3 = scmp.lt.s32.totalorder %s313_s12, %s313_s12 }
  0x2b   :  { %229 = vmatmul.mubr.msk.bf16.vlgmr.msra.gmra.mxu0 %vm78_vm1, %v62_v3 }
  0x2c   :  { %235 = vmatpush3.bf16.msra.mxu1 %v250_v5  ;;  %p320_p4 = por %p319_p3, %p318_p2 }
  0x2e   :  { %p321_p5 = pnand %p320_p4, %p314_p1 }
  0xeb   :  { %v116_v7 = vpop.f32.mrf.mxu0 }
  0xec   :  { %v117_v8 = vadd.f32 %v214_v6, %v116_v7 }
  0xed   :  { %v230_v9 = vpop.f32.mrf.mxu0 }
  0xee   :  { %v122_v10 = vmax.f32 %v117_v8, 0.0 }
  0xef   :  { %v119_v11 = vpop.f32.mrf.mxu0 }
  0xf0   :  { %v123_v12 = vpack.c.bf16 %v122_v10, %v122_v10 }
  0xf1   :  { %v231_v13 = vpop.f32.mrf.mxu0 }
  0xf2   :  { %237 = vmatmul.mubr.msk.bf16.vlgmr.msra.gmra.mxu1 %vm147_vm2, %v123_v12 }
 0x1b2   :  { %v185_v15 = vpop.f32.mrf.mxu1 }
 0x1b3   :  { %v186_v16 = vadd.f32 %v217_v14, %v185_v15 }
 0x1b4   :  { %v238_v17 = vpop.f32.mrf.mxu1 }
 0x1b5   :  { %v191_v18 = vmul.f32 0.5, %v186_v16 }
 0x1b6   :  { %v188_v19 = vpop.f32.mrf.mxu1 }
 0x1b7   :  { %251 = vtanh.f32 %v191_v18 }
 0x1b8   :  { %v239_v20 = vpop.f32.mrf.mxu1 }
 0x1c4   :  { %v252_v21 = vpop.eup %251 }
 0x1c5   :  { %v193_v22 = vmul.f32 0.5, %v252_v21 }
 0x1c7   :  { %v194_v23 = vadd.f32 0.5, %v193_v22 }
 0x1c9   :  { %v195_v24 = vpack.c.bf16 %v194_v23, %v194_v23 }
 0x1cb   :  { %197 = vst.msk [vmem:[#allocation8] sm:$0xf] %vm196_vm3, %v195_v24 }
 0x1cc   :  { %324 = shalt.err (!%p321_p5)
}
 0x1cd   :  { %207 = dma.vmem_to_hbm [thread:$0]  %s205_s11, 64, %s400_s5, [#allocation4]  }
 0x1ce   :  { %337 = dma.done.wait [#allocation4], 64  }
 0x1cf   :  { %338 = vsyncadd [#allocation4], 4294967232 }
 0x1d0   :  { %211 = vsyncpa [#allocation3], 1 }
 0x1d1   :  { %212 = vsyncpa [#allocation6], 1 }
 0x1d2   :  { %213 = vsyncpa [#allocation4], 1 }

</bundles_post_ra>
